<compile_context>
chip_gen: v7x
topology: tpu7x:2x2x1
jax: 0.10.0
libtpu: 0.0.40
codegen_flags: <defaults>
</compile_context>

<pallas_src>
import jax
import jax.numpy as jnp
from jax.experimental import pallas as pl
from jax.experimental.pallas import tpu as pltpu

_TARGET_TILE_BYTES = 4 << 20   # ~4 MiB per input block -> 4x (in+out, double-buffered) = 16 MiB
_VMEM_LIMIT_BYTES = 48 << 20   # explicit headroom; within physical VMEM on v5e/v6e/v7x


def _scale_kernel(scale_ref, x_ref, o_ref):
    # scale_ref: (1,) float32 scalar in SMEM; x_ref / o_ref: (tile_r, lanes) VMEM tiles.
    o_ref[...] = (x_ref[...].astype(jnp.float32) * scale_ref[0]).astype(o_ref.dtype)


@jax.jit
def scale_forward(x: jax.Array, scale: jax.Array) -> jax.Array:
    """Elementwise x * scale (scale has shape (1,)). Matches PyTorch `Scale.forward`."""
    orig_shape = x.shape
    dtype = x.dtype
    total = x.size
    itemsize = jnp.dtype(dtype).itemsize
    scale_f32 = scale.astype(jnp.float32)

    # Widest lane-dense last dim that divides the element count exactly, so both the input
    # and output reshapes are free bitcasts (no jnp.pad, no trailing slice, no extra passes).
    lanes = next((l for l in (512, 256, 128) if total % l == 0), None)
    if lanes is None or total == 0:
        # TODO(synk): ragged sizes (total % 128 != 0) could use a masked-tail grid step;
        # a plain fused XLA multiply is already HBM-bandwidth-optimal for that path.
        return (x.astype(jnp.float32) * scale_f32[0]).astype(dtype)

    rows = total // lanes
    x2d = x.reshape(rows, lanes)          # metadata-only reshape, no HBM traffic

    # Sublane packing granularity: 8 for 32-bit, 16 for 16-bit, 32 for 8-bit dtypes.
    sub = max(8, 32 // itemsize)

    # Row tile: ~_TARGET_TILE_BYTES per block, sublane-aligned.
    tile_r = max(sub, (_TARGET_TILE_BYTES // (lanes * itemsize)) // sub * sub)
    if rows > sub:
        # Guarantee >= 2 grid steps so the "parallel" axis can shard across both v7x TCs.
        half_rows = -(-((rows + 1) // 2) // sub) * sub
        tile_r = min(tile_r, half_rows)
    tile_r = min(tile_r, rows)
    grid = (pl.cdiv(rows, tile_r),)       # ragged final row block is masked by Pallas

    out2d = pl.pallas_call(
        _scale_kernel,
        out_shape=jax.ShapeDtypeStruct((rows, lanes), dtype),
        grid_spec=pltpu.PrefetchScalarGridSpec(
            num_scalar_prefetch=0,
            grid=grid,
            in_specs=[
                pl.BlockSpec(memory_space=pltpu.SMEM),             # scale scalar
                pl.BlockSpec((tile_r, lanes), lambda i: (i, 0)),   # x tile
            ],
            out_specs=pl.BlockSpec((tile_r, lanes), lambda i: (i, 0)),
        ),
        compiler_params=pltpu.CompilerParams(
            dimension_semantics=("parallel",),
            vmem_limit_bytes=_VMEM_LIMIT_BYTES,
        ),
    )(scale_f32, x2d)

    return out2d.reshape(orig_shape)      # metadata-only reshape back


if __name__ == "__main__":
    key = jax.random.PRNGKey(0)

    # Matches nn.Parameter(torch.FloatTensor([init_value])); use a non-trivial value
    # so the multiply is actually exercised.
    init_value = 1.0
    scale = jnp.array([init_value], dtype=jnp.float32) * jnp.float32(1.5)

    # Primary test shape (single full-array block path).
    x = jax.random.normal(key, (2, 4, 16, 16), dtype=jnp.float32)
    out = jax.block_until_ready(scale_forward(x, scale))
    ref = x * scale[0]
    assert out.shape == x.shape and out.dtype == x.dtype
    assert jnp.allclose(out, ref, rtol=1e-6, atol=1e-6)

    # Secondary shape exercising a 2-step grid with a ragged (masked) final row block.
    x2 = jax.random.normal(key, (3, 5, 16, 16), dtype=jnp.float32)
    out2 = jax.block_until_ready(scale_forward(x2, scale))
    ref2 = x2 * scale[0]
    assert out2.shape == x2.shape and out2.dtype == x2.dtype
    assert jnp.allclose(out2, ref2, rtol=1e-6, atol=1e-6)

    print("KERNEL_OK")
</pallas_src>

<mosaic_0001>
module attributes {stable_mosaic.version = 11 : i64} {
  func.func @_scale_kernel(%arg0: i32, %arg1: memref<1xf32, #tpu.memory_space<smem>>, %arg2: memref<4x512xf32, #tpu.memory_space<vmem>>, %arg3: memref<4x512xf32, #tpu.memory_space<vmem>>) attributes {dimension_semantics = [#tpu.dimension_semantics<parallel>], iteration_bounds = array<i64: 1>, scalar_prefetch = 0 : i64, scratch_operands = 0 : i64, tpu.core_type = #tpu.core_type<tc>, window_params = [{transform_indices = @transform_0, window_bounds = array<i64: 1>}, {transform_indices = @transform_1, window_bounds = array<i64: 4, 512>}, {transform_indices = @transform_2, window_bounds = array<i64: 4, 512>}]} {
    %c0 = arith.constant 0 : index
    %c0_0 = arith.constant 0 : index
    %0 = vector.load %arg2[%c0, %c0_0] : memref<4x512xf32, #tpu.memory_space<vmem>>, vector<4x512xf32>
    %c0_1 = arith.constant 0 : index
    %1 = memref.load %arg1[%c0_1] : memref<1xf32, #tpu.memory_space<smem>>
    %2 = vector.broadcast %1 : f32 to vector<4x512xf32>
    %3 = arith.mulf %0, %2 : vector<4x512xf32>
    %c0_2 = arith.constant 0 : index
    %c0_3 = arith.constant 0 : index
    %4 = vector.load %arg3[%c0_2, %c0_3] : memref<4x512xf32, #tpu.memory_space<vmem>>, vector<4x512xf32>
    tpu.vector_store %arg3[%c0_2, %c0_3], %3 {strides = array<i32>} : memref<4x512xf32, #tpu.memory_space<vmem>>, vector<4x512xf32>,
    return
  }
  func.func @transform_0(%arg0: i32) -> i32 {
    %c0_i32 = arith.constant 0 : i32
    %c0_i32_0 = arith.constant 0 : i32
    return %c0_i32 : i32
  }
  func.func @transform_1(%arg0: i32) -> (i32, i32) {
    %c0_i32 = arith.constant 0 : i32
    %c0_i32_0 = arith.constant 0 : i32
    return %arg0, %c0_i32 : i32, i32
  }
  func.func @transform_2(%arg0: i32) -> (i32, i32) {
    %c0_i32 = arith.constant 0 : i32
    %c0_i32_0 = arith.constant 0 : i32
    return %arg0, %c0_i32 : i32, i32
  }
}

</mosaic_0001>

<bundles_post_ra>
// kernel: scale_forward.1
= control target key start
LH: loop header
LB: loop body
LE: loop exit
PB: predicated region body
PF: predicated region fallthrough
CT: control target
= control target key end

     0   :  { %s54_s0 = inlined_call_operand.<no memory space> [shape: f32[1], index: 0, kind: input, shape index: {}]   ;;  %s55_s1 = inlined_call_operand.vmem [shape: f32[4,512], index: 1, kind: input, shape index: {}]   ;;  %s56_s2 = inlined_call_operand.vmem [shape: f32[4,512], index: 2, kind: output, shape index: {}]  }
   0x1   :  { %v12_v0 = vld [vmem:[%s55_s1] sm:$0xff]  ;;  %v15_v1 = vstv %s54_s0  ;;  %v13_v2 = vld [vmem:[%s55_s1 + $0x8] sm:$0xff] }
   0x2   :  { %v16_v3 = vmul.f32 %v15_v1, %v12_v0  ;;  %v17_v4 = vmul.f32 %v15_v1, %v13_v2 }
   0x4   :  { %18 = vst [vmem:[%s56_s2] sm:$0xff] %v16_v3  ;;  %19 = vst [vmem:[%s56_s2 + $0x8] sm:$0xff] %v17_v4 }

</bundles_post_ra>
